<compile_context>
chip_gen: v6e
topology: v6e:2x2x1
jax: 0.10.0
libtpu: 0.0.40
codegen_flags: <defaults>
</compile_context>

<pallas_src>
import math
import functools

import jax
import jax.numpy as jnp
from jax.experimental import pallas as pl
from jax.experimental.pallas import tpu as pltpu


def _self_attention_kernel(num_heads, head_dim, tq, seq_len, matmul_dtype,
                           x_ref, mask_ref, wqkv_ref, bqkv_ref,
                           out_ref, att_ref, ctx_s):
    """One (batch, query-tile) grid step.

    x_ref    : (1, L, H)   full sequence (K/V need all of it)
    mask_ref : (1, 1, 1, L)
    wqkv_ref : (H, 3H)     fused [Wq^T | Wk^T | Wv^T]
    bqkv_ref : (1, 3H)
    out_ref  : (1, TQ, H)
    att_ref  : (1, num_heads, TQ, L)
    ctx_s    : (TQ, H) f32 VMEM scratch (context accumulator -> one lane-dense store)
    """
    hidden = num_heads * head_dim
    scale = 1.0 / math.sqrt(head_dim)

    x = x_ref[0].astype(matmul_dtype)          # (L, H)
    wqkv = wqkv_ref[...]                       # (H, 3H), already matmul_dtype
    bias = bqkv_ref[...]                       # (1, 3H) f32
    mask = mask_ref[0, 0]                      # (1, L)  broadcast over query rows

    if tq == seq_len:
        # Single fused projection: one wide MXU pass produces Q|K|V.
        qkv = jnp.dot(x, wqkv, preferred_element_type=jnp.float32) + bias
        q = qkv[:, :hidden] * scale            # fold 1/sqrt(d) once into q
        k = qkv[:, hidden:2 * hidden]
        v = qkv[:, 2 * hidden:]
    else:
        # Q only for this tile's rows; K/V recomputed over the full sequence
        # (keeps both grid axes "parallel" / pipelineable).
        q_start = pl.multiple_of(pl.program_id(1) * tq, tq)
        x_tile = x_ref[0, pl.ds(q_start, tq), :].astype(matmul_dtype)
        q = (jnp.dot(x_tile, wqkv[:, :hidden],
                     preferred_element_type=jnp.float32)
             + bias[:, :hidden]) * scale
        kv = jnp.dot(x, wqkv[:, hidden:],
                     preferred_element_type=jnp.float32) + bias[:, hidden:]
        k = kv[:, :hidden]
        v = kv[:, hidden:]

    # Static unroll over heads (num_heads is small here). For many heads this
    # should become a head grid axis / batched dot_general to bound live ranges.
    for h in range(num_heads):
        lo = h * head_dim
        hi = lo + head_dim
        qh = q[:, lo:hi]                       # (TQ, d)
        kh = k[:, lo:hi]                       # (L, d)
        vh = v[:, lo:hi]                       # (L, d)

        # Contract over head_dim directly -- no kh.T relayout through the XLU.
        scores = jax.lax.dot_general(
            qh, kh, (((1,), (1,)), ((), ())),
            preferred_element_type=jnp.float32)          # (TQ, L)
        scores = scores + mask

        m = jnp.max(scores, axis=-1, keepdims=True)
        e = jnp.exp(scores - m)
        denom = jnp.sum(e, axis=-1, keepdims=True)
        probs = e * pl.reciprocal(denom, approx=True)    # EUP vrcp

        ctx = jnp.dot(probs, vh, preferred_element_type=jnp.float32)  # (TQ, d)

        att_ref[0, h] = probs                  # lane-dense (TQ, L) HBM-block store
        ctx_s[:, lo:hi] = ctx                  # cheap VMEM scratch store

    # Single lane-dense output store; tanh applied once over (TQ, H).
    out_ref[0] = jnp.tanh(ctx_s[...])


def self_attention_pallas(x, mask, wq, bq, wk, bk, wv, bv, *,
                          num_heads, q_tile=None, matmul_dtype=jnp.float32):
    """x: (B, L, H) f32; mask: (B, 1, 1, L) f32; w*: (H, H) torch Linear (out, in)."""
    B, L, H = x.shape
    head_dim = H // num_heads

    tq = q_tile if q_tile is not None else min(L, 128)
    assert L % tq == 0, "seq_len must be divisible by the query tile"
    n_qt = L // tq

    # Fused QKV weight/bias so the kernel does one wide matmul: x @ [Wq|Wk|Wv]^T.
    wqkv = jnp.concatenate([wq.T, wk.T, wv.T], axis=1).astype(matmul_dtype)   # (H, 3H)
    bqkv = jnp.concatenate([bq, bk, bv])[None, :].astype(jnp.float32)         # (1, 3H)

    kernel = functools.partial(_self_attention_kernel,
                               num_heads, head_dim, tq, L, matmul_dtype)

    out_shapes = (
        jax.ShapeDtypeStruct((B, L, H), jnp.float32),
        jax.ShapeDtypeStruct((B, num_heads, L, L), jnp.float32),
    )

    sa_out, att = pl.pallas_call(
        kernel,
        out_shape=out_shapes,
        grid_spec=pltpu.PrefetchScalarGridSpec(
            num_scalar_prefetch=0,
            grid=(B, n_qt),
            in_specs=[
                pl.BlockSpec((1, L, H), lambda b, qt: (b, 0, 0)),        # x (full seq)
                pl.BlockSpec((1, 1, 1, L), lambda b, qt: (b, 0, 0, 0)),  # mask
                pl.BlockSpec((H, 3 * H), lambda b, qt: (0, 0)),          # fused Wqkv
                pl.BlockSpec((1, 3 * H), lambda b, qt: (0, 0)),          # fused bias
            ],
            out_specs=[
                pl.BlockSpec((1, tq, H), lambda b, qt: (b, qt, 0)),                 # tanh(SA_out)
                pl.BlockSpec((1, num_heads, tq, L), lambda b, qt: (b, 0, qt, 0)),   # att
            ],
            scratch_shapes=[pltpu.VMEM((tq, H), jnp.float32)],
        ),
        compiler_params=pltpu.CompilerParams(
            dimension_semantics=("parallel", "parallel"),
            vmem_limit_bytes=48 * 1024 * 1024,
        ),
    )(x, mask, wqkv, bqkv)
    return sa_out, att


def _reference(x, mask, wq, bq, wk, bk, wv, bv, num_heads):
    """Pure-JAX reference mirroring BertSelfAttention + tanh."""
    B, L, H = x.shape
    d = H // num_heads

    def proj(w, b):
        return (x @ w.T + b).reshape(B, L, num_heads, d).transpose(0, 2, 1, 3)

    q, k, v = proj(wq, bq), proj(wk, bk), proj(wv, bv)
    scores = jnp.einsum("bhqd,bhkd->bhqk", q, k) / math.sqrt(d)
    scores = scores + mask  # (B,1,1,L) broadcast
    probs = jax.nn.softmax(scores, axis=-1)
    ctx = jnp.einsum("bhqk,bhkd->bhqd", probs, v)
    ctx = ctx.transpose(0, 2, 1, 3).reshape(B, L, H)
    return jnp.tanh(ctx), probs


if __name__ == "__main__":
    B, L, H = 2, 8, 32          # batch, seq (== opt.max_seq_len), hidden
    NUM_HEADS = 4               # config.num_attention_heads ; head_dim = 8

    key = jax.random.PRNGKey(0)
    kx, kq, kk, kv, kbq, kbk, kbv = jax.random.split(key, 7)

    x = jax.random.normal(kx, (B, L, H), dtype=jnp.float32)
    # zero attention mask, exactly as in the PyTorch forward
    mask = jnp.zeros((B, 1, 1, L), dtype=jnp.float32)

    std = 0.02  # BERT initializer_range
    wq = std * jax.random.normal(kq, (H, H), dtype=jnp.float32)   # torch Linear: (out, in)
    wk = std * jax.random.normal(kk, (H, H), dtype=jnp.float32)
    wv = std * jax.random.normal(kv, (H, H), dtype=jnp.float32)
    bq = std * jax.random.normal(kbq, (H,), dtype=jnp.float32)
    bk = std * jax.random.normal(kbk, (H,), dtype=jnp.float32)
    bv = std * jax.random.normal(kbv, (H,), dtype=jnp.float32)

    sa_out, att = self_attention_pallas(x, mask, wq, bq, wk, bk, wv, bv,
                                        num_heads=NUM_HEADS)
    jax.block_until_ready((sa_out, att))

    ref_out, ref_att = _reference(x, mask, wq, bq, wk, bk, wv, bv, NUM_HEADS)
    assert sa_out.shape == (B, L, H)
    assert att.shape == (B, NUM_HEADS, L, L)
    # Tolerance relaxed slightly vs 1e-5 because the softmax denominator uses
    # the approximate EUP reciprocal (pl.reciprocal(approx=True)).
    assert jnp.allclose(sa_out, ref_out, atol=2e-3, rtol=2e-3)
    assert jnp.allclose(att, ref_att, atol=2e-3, rtol=2e-3)

    print("KERNEL_OK")
</pallas_src>

<mosaic_0001>
module attributes {stable_mosaic.version = 11 : i64} {
  func.func @_self_attention_kernel(%arg0: i32, %arg1: i32, %arg2: memref<1x8x32xf32, #tpu.memory_space<vmem>>, %arg3: memref<1x1x1x8xf32, #tpu.memory_space<vmem>>, %arg4: memref<32x96xf32, #tpu.memory_space<vmem>>, %arg5: memref<1x96xf32, #tpu.memory_space<vmem>>, %arg6: memref<1x8x32xf32, #tpu.memory_space<vmem>>, %arg7: memref<1x4x8x8xf32, #tpu.memory_space<vmem>>, %arg8: memref<8x32xf32, #tpu.memory_space<vmem>>) attributes {dimension_semantics = [#tpu.dimension_semantics<parallel>, #tpu.dimension_semantics<parallel>], iteration_bounds = array<i64: 2, 1>, scalar_prefetch = 0 : i64, scratch_operands = 1 : i64, tpu.core_type = #tpu.core_type<tc>, window_params = [{transform_indices = @transform_0, window_bounds = array<i64: 1, 8, 32>}, {transform_indices = @transform_1, window_bounds = array<i64: 1, 1, 1, 8>}, {pipeline_mode = #tpu.pipeline_mode<synchronous>, transform_indices = @transform_2, window_bounds = array<i64: 32, 96>}, {pipeline_mode = #tpu.pipeline_mode<synchronous>, transform_indices = @transform_3, window_bounds = array<i64: 1, 96>}, {transform_indices = @transform_4, window_bounds = array<i64: 1, 8, 32>}, {transform_indices = @transform_5, window_bounds = array<i64: 1, 4, 8, 8>}]} {
    %c0 = arith.constant 0 : index
    %c0_0 = arith.constant 0 : index
    %c0_1 = arith.constant 0 : index
    %0 = vector.load %arg2[%c0, %c0_0, %c0_1] : memref<1x8x32xf32, #tpu.memory_space<vmem>>, vector<1x8x32xf32>
    %1 = vector.shape_cast %0 : vector<1x8x32xf32> to vector<8x32xf32>
    %c0_2 = arith.constant 0 : index
    %c0_3 = arith.constant 0 : index
    %2 = vector.load %arg4[%c0_2, %c0_3] : memref<32x96xf32, #tpu.memory_space<vmem>>, vector<32x96xf32>
    %c0_4 = arith.constant 0 : index
    %c0_5 = arith.constant 0 : index
    %3 = vector.load %arg5[%c0_4, %c0_5] : memref<1x96xf32, #tpu.memory_space<vmem>>, vector<1x96xf32>
    %c0_6 = arith.constant 0 : index
    %c0_7 = arith.constant 0 : index
    %c0_8 = arith.constant 0 : index
    %c0_9 = arith.constant 0 : index
    %4 = vector.load %arg3[%c0_6, %c0_7, %c0_8, %c0_9] : memref<1x1x1x8xf32, #tpu.memory_space<vmem>>, vector<1x1x1x8xf32>
    %5 = vector.shape_cast %4 : vector<1x1x1x8xf32> to vector<1x8xf32>
    %cst = arith.constant dense<0.000000e+00> : vector<8x96xf32>
    %6 = tpu.matmul %1, %2, %cst {dimension_numbers = #tpu.dot_dimension_numbers<[1], [0], [0], [1], [0, 0, 1, 1], [], []>} : vector<8x32xf32>, vector<32x96xf32>, vector<8x96xf32> -> vector<8x96xf32>
    %7 = vector.broadcast %3 : vector<1x96xf32> to vector<8x96xf32>
    %8 = arith.addf %6, %7 : vector<8x96xf32>
    %9 = vector.extract_strided_slice %8 {offsets = [0, 0], sizes = [8, 32], strides = [1, 1]} : vector<8x96xf32> to vector<8x32xf32>
    %cst_10 = arith.constant 0.353553385 : f32
    %10 = vector.broadcast %cst_10 : f32 to vector<8x32xf32>
    %11 = arith.mulf %9, %10 : vector<8x32xf32>
    %12 = vector.extract_strided_slice %8 {offsets = [0, 32], sizes = [8, 32], strides = [1, 1]} : vector<8x96xf32> to vector<8x32xf32>
    %13 = vector.extract_strided_slice %8 {offsets = [0, 64], sizes = [8, 32], strides = [1, 1]} : vector<8x96xf32> to vector<8x32xf32>
    %14 = vector.extract_strided_slice %11 {offsets = [0, 0], sizes = [8, 8], strides = [1, 1]} : vector<8x32xf32> to vector<8x8xf32>
    %15 = vector.extract_strided_slice %12 {offsets = [0, 0], sizes = [8, 8], strides = [1, 1]} : vector<8x32xf32> to vector<8x8xf32>
    %16 = vector.extract_strided_slice %13 {offsets = [0, 0], sizes = [8, 8], strides = [1, 1]} : vector<8x32xf32> to vector<8x8xf32>
    %cst_11 = arith.constant dense<0.000000e+00> : vector<8x8xf32>
    %17 = tpu.matmul %14, %15, %cst_11 {dimension_numbers = #tpu.dot_dimension_numbers<[1], [1], [0], [0], [0, 0, 1, 0], [], []>} : vector<8x8xf32>, vector<8x8xf32>, vector<8x8xf32> -> vector<8x8xf32>
    %18 = vector.broadcast %5 : vector<1x8xf32> to vector<8x8xf32>
    %19 = arith.addf %17, %18 : vector<8x8xf32>
    %cst_12 = arith.constant dense<0xFF800000> : vector<8xf32>
    %20 = vector.multi_reduction <maximumf>, %19, %cst_12 [1] : vector<8x8xf32> to vector<8xf32>
    %21 = vector.shape_cast %20 : vector<8xf32> to vector<8x1xf32>
    %22 = vector.broadcast %21 : vector<8x1xf32> to vector<8x8xf32>
    %23 = arith.subf %19, %22 : vector<8x8xf32>
    %24 = math.exp %23 : vector<8x8xf32>
    %cst_13 = arith.constant dense<0.000000e+00> : vector<8xf32>
    %25 = vector.multi_reduction <add>, %24, %cst_13 [1] : vector<8x8xf32> to vector<8xf32>
    %26 = vector.shape_cast %25 : vector<8xf32> to vector<8x1xf32>
    %27 = tpu.reciprocal %26 {approx = true} : vector<8x1xf32> -> vector<8x1xf32>
    %28 = vector.broadcast %27 : vector<8x1xf32> to vector<8x8xf32>
    %29 = arith.mulf %24, %28 : vector<8x8xf32>
    %cst_14 = arith.constant dense<0.000000e+00> : vector<8x8xf32>
    %30 = tpu.matmul %29, %16, %cst_14 {dimension_numbers = #tpu.dot_dimension_numbers<[1], [0], [0], [1], [0, 0, 1, 1], [], []>} : vector<8x8xf32>, vector<8x8xf32>, vector<8x8xf32> -> vector<8x8xf32>
    %c0_15 = arith.constant 0 : index
    %c0_16 = arith.constant 0 : index
    %c0_17 = arith.constant 0 : index
    %c0_18 = arith.constant 0 : index
    %31 = vector.load %arg7[%c0_15, %c0_16, %c0_17, %c0_18] : memref<1x4x8x8xf32, #tpu.memory_space<vmem>>, vector<1x1x8x8xf32>
    %32 = vector.shape_cast %31 : vector<1x1x8x8xf32> to vector<8x8xf32>
    %33 = vector.shape_cast %29 : vector<8x8xf32> to vector<1x1x8x8xf32>
    tpu.vector_store %arg7[%c0_15, %c0_16, %c0_17, %c0_18], %33 {strides = array<i32>} : memref<1x4x8x8xf32, #tpu.memory_space<vmem>>, vector<1x1x8x8xf32>,
    %c0_19 = arith.constant 0 : index
    %c0_20 = arith.constant 0 : index
    %34 = vector.load %arg8[%c0_19, %c0_20] : memref<8x32xf32, #tpu.memory_space<vmem>>, vector<8x8xf32>
    tpu.vector_store %arg8[%c0_19, %c0_20], %30 {strides = array<i32>} : memref<8x32xf32, #tpu.memory_space<vmem>>, vector<8x8xf32>,
    %35 = vector.extract_strided_slice %11 {offsets = [0, 8], sizes = [8, 8], strides = [1, 1]} : vector<8x32xf32> to vector<8x8xf32>
    %36 = vector.extract_strided_slice %12 {offsets = [0, 8], sizes = [8, 8], strides = [1, 1]} : vector<8x32xf32> to vector<8x8xf32>
    %37 = vector.extract_strided_slice %13 {offsets = [0, 8], sizes = [8, 8], strides = [1, 1]} : vector<8x32xf32> to vector<8x8xf32>
    %cst_21 = arith.constant dense<0.000000e+00> : vector<8x8xf32>
    %38 = tpu.matmul %35, %36, %cst_21 {dimension_numbers = #tpu.dot_dimension_numbers<[1], [1], [0], [0], [0, 0, 1, 0], [], []>} : vector<8x8xf32>, vector<8x8xf32>, vector<8x8xf32> -> vector<8x8xf32>
    %39 = vector.broadcast %5 : vector<1x8xf32> to vector<8x8xf32>
    %40 = arith.addf %38, %39 : vector<8x8xf32>
    %cst_22 = arith.constant dense<0xFF800000> : vector<8xf32>
    %41 = vector.multi_reduction <maximumf>, %40, %cst_22 [1] : vector<8x8xf32> to vector<8xf32>
    %42 = vector.shape_cast %41 : vector<8xf32> to vector<8x1xf32>
    %43 = vector.broadcast %42 : vector<8x1xf32> to vector<8x8xf32>
    %44 = arith.subf %40, %43 : vector<8x8xf32>
    %45 = math.exp %44 : vector<8x8xf32>
    %cst_23 = arith.constant dense<0.000000e+00> : vector<8xf32>
    %46 = vector.multi_reduction <add>, %45, %cst_23 [1] : vector<8x8xf32> to vector<8xf32>
    %47 = vector.shape_cast %46 : vector<8xf32> to vector<8x1xf32>
    %48 = tpu.reciprocal %47 {approx = true} : vector<8x1xf32> -> vector<8x1xf32>
    %49 = vector.broadcast %48 : vector<8x1xf32> to vector<8x8xf32>
    %50 = arith.mulf %45, %49 : vector<8x8xf32>
    %cst_24 = arith.constant dense<0.000000e+00> : vector<8x8xf32>
    %51 = tpu.matmul %50, %37, %cst_24 {dimension_numbers = #tpu.dot_dimension_numbers<[1], [0], [0], [1], [0, 0, 1, 1], [], []>} : vector<8x8xf32>, vector<8x8xf32>, vector<8x8xf32> -> vector<8x8xf32>
    %c0_25 = arith.constant 0 : index
    %c1 = arith.constant 1 : index
    %c0_26 = arith.constant 0 : index
    %c0_27 = arith.constant 0 : index
    %52 = vector.load %arg7[%c0_25, %c1, %c0_26, %c0_27] : memref<1x4x8x8xf32, #tpu.memory_space<vmem>>, vector<1x1x8x8xf32>
    %53 = vector.shape_cast %52 : vector<1x1x8x8xf32> to vector<8x8xf32>
    %54 = vector.shape_cast %50 : vector<8x8xf32> to vector<1x1x8x8xf32>
    tpu.vector_store %arg7[%c0_25, %c1, %c0_26, %c0_27], %54 {strides = array<i32>} : memref<1x4x8x8xf32, #tpu.memory_space<vmem>>, vector<1x1x8x8xf32>,
    %c0_28 = arith.constant 0 : index
    %c8 = arith.constant 8 : index
    %55 = vector.load %arg8[%c0_28, %c8] : memref<8x32xf32, #tpu.memory_space<vmem>>, vector<8x8xf32>
    tpu.vector_store %arg8[%c0_28, %c8], %51 {strides = array<i32>} : memref<8x32xf32, #tpu.memory_space<vmem>>, vector<8x8xf32>,
    %56 = vector.extract_strided_slice %11 {offsets = [0, 16], sizes = [8, 8], strides = [1, 1]} : vector<8x32xf32> to vector<8x8xf32>
    %57 = vector.extract_strided_slice %12 {offsets = [0, 16], sizes = [8, 8], strides = [1, 1]} : vector<8x32xf32> to vector<8x8xf32>
    %58 = vector.extract_strided_slice %13 {offsets = [0, 16], sizes = [8, 8], strides = [1, 1]} : vector<8x32xf32> to vector<8x8xf32>
    %cst_29 = arith.constant dense<0.000000e+00> : vector<8x8xf32>
    %59 = tpu.matmul %56, %57, %cst_29 {dimension_numbers = #tpu.dot_dimension_numbers<[1], [1], [0], [0], [0, 0, 1, 0], [], []>} : vector<8x8xf32>, vector<8x8xf32>, vector<8x8xf32> -> vector<8x8xf32>
    %60 = vector.broadcast %5 : vector<1x8xf32> to vector<8x8xf32>
    %61 = arith.addf %59, %60 : vector<8x8xf32>
    %cst_30 = arith.constant dense<0xFF800000> : vector<8xf32>
    %62 = vector.multi_reduction <maximumf>, %61, %cst_30 [1] : vector<8x8xf32> to vector<8xf32>
    %63 = vector.shape_cast %62 : vector<8xf32> to vector<8x1xf32>
    %64 = vector.broadcast %63 : vector<8x1xf32> to vector<8x8xf32>
    %65 = arith.subf %61, %64 : vector<8x8xf32>
    %66 = math.exp %65 : vector<8x8xf32>
    %cst_31 = arith.constant dense<0.000000e+00> : vector<8xf32>
    %67 = vector.multi_reduction <add>, %66, %cst_31 [1] : vector<8x8xf32> to vector<8xf32>
    %68 = vector.shape_cast %67 : vector<8xf32> to vector<8x1xf32>
    %69 = tpu.reciprocal %68 {approx = true} : vector<8x1xf32> -> vector<8x1xf32>
    %70 = vector.broadcast %69 : vector<8x1xf32> to vector<8x8xf32>
    %71 = arith.mulf %66, %70 : vector<8x8xf32>
    %cst_32 = arith.constant dense<0.000000e+00> : vector<8x8xf32>
    %72 = tpu.matmul %71, %58, %cst_32 {dimension_numbers = #tpu.dot_dimension_numbers<[1], [0], [0], [1], [0, 0, 1, 1], [], []>} : vector<8x8xf32>, vector<8x8xf32>, vector<8x8xf32> -> vector<8x8xf32>
    %c0_33 = arith.constant 0 : index
    %c2 = arith.constant 2 : index
    %c0_34 = arith.constant 0 : index
    %c0_35 = arith.constant 0 : index
    %73 = vector.load %arg7[%c0_33, %c2, %c0_34, %c0_35] : memref<1x4x8x8xf32, #tpu.memory_space<vmem>>, vector<1x1x8x8xf32>
    %74 = vector.shape_cast %73 : vector<1x1x8x8xf32> to vector<8x8xf32>
    %75 = vector.shape_cast %71 : vector<8x8xf32> to vector<1x1x8x8xf32>
    tpu.vector_store %arg7[%c0_33, %c2, %c0_34, %c0_35], %75 {strides = array<i32>} : memref<1x4x8x8xf32, #tpu.memory_space<vmem>>, vector<1x1x8x8xf32>,
    %c0_36 = arith.constant 0 : index
    %c16 = arith.constant 16 : index
    %76 = vector.load %arg8[%c0_36, %c16] : memref<8x32xf32, #tpu.memory_space<vmem>>, vector<8x8xf32>
    tpu.vector_store %arg8[%c0_36, %c16], %72 {strides = array<i32>} : memref<8x32xf32, #tpu.memory_space<vmem>>, vector<8x8xf32>,
    %77 = vector.extract_strided_slice %11 {offsets = [0, 24], sizes = [8, 8], strides = [1, 1]} : vector<8x32xf32> to vector<8x8xf32>
    %78 = vector.extract_strided_slice %12 {offsets = [0, 24], sizes = [8, 8], strides = [1, 1]} : vector<8x32xf32> to vector<8x8xf32>
    %79 = vector.extract_strided_slice %13 {offsets = [0, 24], sizes = [8, 8], strides = [1, 1]} : vector<8x32xf32> to vector<8x8xf32>
    %cst_37 = arith.constant dense<0.000000e+00> : vector<8x8xf32>
    %80 = tpu.matmul %77, %78, %cst_37 {dimension_numbers = #tpu.dot_dimension_numbers<[1], [1], [0], [0], [0, 0, 1, 0], [], []>} : vector<8x8xf32>, vector<8x8xf32>, vector<8x8xf32> -> vector<8x8xf32>
    %81 = vector.broadcast %5 : vector<1x8xf32> to vector<8x8xf32>
    %82 = arith.addf %80, %81 : vector<8x8xf32>
    %cst_38 = arith.constant dense<0xFF800000> : vector<8xf32>
    %83 = vector.multi_reduction <maximumf>, %82, %cst_38 [1] : vector<8x8xf32> to vector<8xf32>
    %84 = vector.shape_cast %83 : vector<8xf32> to vector<8x1xf32>
    %85 = vector.broadcast %84 : vector<8x1xf32> to vector<8x8xf32>
    %86 = arith.subf %82, %85 : vector<8x8xf32>
    %87 = math.exp %86 : vector<8x8xf32>
    %cst_39 = arith.constant dense<0.000000e+00> : vector<8xf32>
    %88 = vector.multi_reduction <add>, %87, %cst_39 [1] : vector<8x8xf32> to vector<8xf32>
    %89 = vector.shape_cast %88 : vector<8xf32> to vector<8x1xf32>
    %90 = tpu.reciprocal %89 {approx = true} : vector<8x1xf32> -> vector<8x1xf32>
    %91 = vector.broadcast %90 : vector<8x1xf32> to vector<8x8xf32>
    %92 = arith.mulf %87, %91 : vector<8x8xf32>
    %cst_40 = arith.constant dense<0.000000e+00> : vector<8x8xf32>
    %93 = tpu.matmul %92, %79, %cst_40 {dimension_numbers = #tpu.dot_dimension_numbers<[1], [0], [0], [1], [0, 0, 1, 1], [], []>} : vector<8x8xf32>, vector<8x8xf32>, vector<8x8xf32> -> vector<8x8xf32>
    %c0_41 = arith.constant 0 : index
    %c3 = arith.constant 3 : index
    %c0_42 = arith.constant 0 : index
    %c0_43 = arith.constant 0 : index
    %94 = vector.load %arg7[%c0_41, %c3, %c0_42, %c0_43] : memref<1x4x8x8xf32, #tpu.memory_space<vmem>>, vector<1x1x8x8xf32>
    %95 = vector.shape_cast %94 : vector<1x1x8x8xf32> to vector<8x8xf32>
    %96 = vector.shape_cast %92 : vector<8x8xf32> to vector<1x1x8x8xf32>
    tpu.vector_store %arg7[%c0_41, %c3, %c0_42, %c0_43], %96 {strides = array<i32>} : memref<1x4x8x8xf32, #tpu.memory_space<vmem>>, vector<1x1x8x8xf32>,
    %c0_44 = arith.constant 0 : index
    %c24 = arith.constant 24 : index
    %97 = vector.load %arg8[%c0_44, %c24] : memref<8x32xf32, #tpu.memory_space<vmem>>, vector<8x8xf32>
    tpu.vector_store %arg8[%c0_44, %c24], %93 {strides = array<i32>} : memref<8x32xf32, #tpu.memory_space<vmem>>, vector<8x8xf32>,
    %c0_45 = arith.constant 0 : index
    %c0_46 = arith.constant 0 : index
    %98 = vector.load %arg8[%c0_45, %c0_46] : memref<8x32xf32, #tpu.memory_space<vmem>>, vector<8x32xf32>
    %99 = math.tanh %98 : vector<8x32xf32>
    %c0_47 = arith.constant 0 : index
    %c0_48 = arith.constant 0 : index
    %c0_49 = arith.constant 0 : index
    %100 = vector.load %arg6[%c0_47, %c0_48, %c0_49] : memref<1x8x32xf32, #tpu.memory_space<vmem>>, vector<1x8x32xf32>
    %101 = vector.shape_cast %100 : vector<1x8x32xf32> to vector<8x32xf32>
    %102 = vector.shape_cast %99 : vector<8x32xf32> to vector<1x8x32xf32>
    tpu.vector_store %arg6[%c0_47, %c0_48, %c0_49], %102 {strides = array<i32>} : memref<1x8x32xf32, #tpu.memory_space<vmem>>, vector<1x8x32xf32>,
    return
  }
  func.func @transform_0(%arg0: i32, %arg1: i32) -> (i32, i32, i32) {
    %c0_i32 = arith.constant 0 : i32
    %c0_i32_0 = arith.constant 0 : i32
    %c0_i32_1 = arith.constant 0 : i32
    return %arg0, %c0_i32, %c0_i32_0 : i32, i32, i32
  }
  func.func @transform_1(%arg0: i32, %arg1: i32) -> (i32, i32, i32, i32) {
    %c0_i32 = arith.constant 0 : i32
    %c0_i32_0 = arith.constant 0 : i32
    %c0_i32_1 = arith.constant 0 : i32
    %c0_i32_2 = arith.constant 0 : i32
    return %arg0, %c0_i32, %c0_i32_0, %c0_i32_1 : i32, i32, i32, i32
  }
  func.func @transform_2(%arg0: i32, %arg1: i32) -> (i32, i32) {
    %c0_i32 = arith.constant 0 : i32
    %c0_i32_0 = arith.constant 0 : i32
    %c0_i32_1 = arith.constant 0 : i32
    return %c0_i32, %c0_i32_0 : i32, i32
  }
  func.func @transform_3(%arg0: i32, %arg1: i32) -> (i32, i32) {
    %c0_i32 = arith.constant 0 : i32
    %c0_i32_0 = arith.constant 0 : i32
    %c0_i32_1 = arith.constant 0 : i32
    return %c0_i32, %c0_i32_0 : i32, i32
  }
  func.func @transform_4(%arg0: i32, %arg1: i32) -> (i32, i32, i32) {
    %c0_i32 = arith.constant 0 : i32
    %c0_i32_0 = arith.constant 0 : i32
    return %arg0, %arg1, %c0_i32 : i32, i32, i32
  }
  func.func @transform_5(%arg0: i32, %arg1: i32) -> (i32, i32, i32, i32) {
    %c0_i32 = arith.constant 0 : i32
    %c0_i32_0 = arith.constant 0 : i32
    %c0_i32_1 = arith.constant 0 : i32
    return %arg0, %c0_i32, %arg1, %c0_i32_0 : i32, i32, i32, i32
  }
}

</mosaic_0001>

<bundles_post_ra>
// kernel: tpu_custom_call.1
= control target key start
LH: loop header
LB: loop body
LE: loop exit
PB: predicated region body
PF: predicated region fallthrough
CT: control target
= control target key end

     0   :  { %s2071_s0 = inlined_call_operand.hbm [shape: f32[2,8,32], index: 0, kind: input, shape index: {}]   ;;  %s2072_s1 = inlined_call_operand.hbm [shape: f32[2,1,1,8], index: 1, kind: input, shape index: {}]   ;;  %s2073_s2 = inlined_call_operand.hbm [shape: f32[32,96], index: 2, kind: input, shape index: {}]   ;;  %s2074_s3 = inlined_call_operand.vmem [shape: f32[1,96], index: 3, kind: input, shape index: {}]   ;;  %s2075_s4 = inlined_call_operand.hbm [shape: f32[2,8,32], index: 4, kind: output, shape index: {0}]   ;;  %s2076_s5 = inlined_call_operand.hbm [shape: f32[2,4,8,8], index: 5, kind: output, shape index: {1}]  }
   0x1   :  { %2079 = sst [smem:[#allocation20_spill]] %s2071_s0 }
   0x2   :  { %2080 = sst [smem:[#allocation21_spill]] %s2073_s2 }
   0x3   :  { %11 = vsyncpa [#allocation4], 0 }
   0x4   :  { %13 = vsyncpa [#allocation4 + $0x1], 0 }
   0x5   :  { %14 = vsyncpa [#allocation7], 0 }
   0x6   :  { %16 = vsyncpa [#allocation7 + $0x1], 0 }
   0x7   :  { %17 = vsyncpa [#allocation5], 0 }
   0x8   :  { %19 = vsyncpa [#allocation5 + $0x1], 0 }
   0x9   :  { %20 = vsyncpa [#allocation11], 0 }
   0xa   :  { %22 = vsyncpa [#allocation11 + $0x1], 0  ;;  %s1765_s18 = smov 0   ;;  %s1767_s19 = smov 0  }
   0xb   :  { %s1769_s20 = smov 0   ;;  %s1771_s21 = smov 0  }
   0xc   :  { %s1773_s22 = smov 0   ;;  %s1775_s23 = smov 0  }
   0xd LB: > { %2081 = sst [smem:[#allocation17_spill]] %s1697_s20  ;;  %s1796_s24 = sadd.s32 4294967295, %s1709_s23   ;;  %s1709_s23 = sphi %s1775_s23, %s28_s23   ;;  %s1705_s22 = sphi %s1773_s22, %s2101_s22   ;;  %s1701_s21 = sphi %s1771_s21, %s2100_s21   ;;  %s1697_s20 = sphi %s1769_s20, %s2096_s20   ;;  %s1693_s19 = sphi %s1767_s19, %s2099_s19   ;;  %s1689_s18 = sphi %s1765_s18, %s2098_s18  }
   0xe   : > { %s1279_s25 = sadd.s32 4294967294, %s1709_s23   ;;  %p60_p0 = scmp.ne.s32.totalorder %s1693_s19, %s1689_s18 }
   0xf   : > { %p61_p1 = scmp.eq.s32.totalorder %s1796_s24, 0  ;;  %p160_p3 = scmp.eq.s32.totalorder %s1279_s25, 1 }
  0x10   : > { %p1280_p5 = scmp.ge.s32.totalorder %s1709_s23, 1  ;;  %p195_p7 = scmp.lt.s32.totalorder %s1709_s23, 3 }
  0x11   : > { %p1805_p4 = por %p61_p1, %p60_p0  ;;  %p1810_p6 = por %p160_p3, %p60_p0 }
  0x12   : > { %p1815_p8 = pnand %p1280_p5, %p195_p7  ;;  %s1711_s29 = smov [#allocation8]  }
  0x13   : > { %s2083_s27 = scalar_select %p1810_p6, 1, 0 }
  0x14   : > { %s207_s30 = sshll.u32 %s1711_s29, 4  ;;  %p1401_p9 = pneg %p1815_p8  ;;  %s208_s30 = int_to_ptr.vmem [resolvable:$true] %s207_s30 }
  0x15   : > { %p1282_p10 = scmp.ge.s32.totalorder %s1709_s23, 2  ;;  %s40_s7 = sadd.s32 1, %s1705_s22 }
  0x16   : > { %p1824_p11 = pnand %p1401_p9, %p61_p1  ;;  %s1520_s8 = scalar_lea.vmem %s208_s30, 512 }
  0x17   : > { %p1521_p13 = scmp.ne.s32.totalorder %s208_s30, %s1520_s8  ;;  %p1528_p5 = scmp.lt.s32.totalorder %s208_s30, %s208_s30 }
  0x18   : > { %p1511_p12 = pneg %p1824_p11  ;;  %p1529_p7 = scmp.lt.s32.totalorder %s1520_s8, %s1520_s8 }
  0x1a   : > { %p1523_p0 = pnand %p1521_p13, %p1511_p12  ;;  %p1530_p2 = por %p1529_p7, %p1528_p5 }
  0x1c   : > { %p1524_p3 = pneg %p1523_p0 }
  0x1e   : > { %p1531_p6 = pnand %p1530_p2, %p1524_p3 }
  0x20   : > { %1534 = shalt.err (!%p1531_p6)
}
  0x21   : > { %s1712_s9 = smov 128   ;;  %s1713_s10 = smov 8  }
  0x22   : > { %s2086_s2 = sld [smem:[#allocation21_spill]]  ;;  %p42_p2 = scmp.ge.s32.totalorder %s40_s7, 2 }
  0x23   : > { %s47_s13 = sadd.s32 1, %s1697_s20  ;;  %p54_p6 = scmp.ne.s32.totalorder %s1697_s20, %s1693_s19 }
  0x24   : > { %p55_p9 = scmp.eq.s32.totalorder %s1709_s23, 0  ;;  %s2103_s7 = smov (%p42_p2, %s40_s7), 0 }
  0x25   : > { %2087 = sst [smem:[#allocation18_spill]] %s2103_s7  ;;  %p2089_p13 = scmp.eq.s32.totalorder %s1796_s24, 1 }
  0x26   : > { %p1842_p12 = por %p55_p9, %p54_p6  ;;  %s44_s16 = ssub.s32 %s1705_s22, %s2103_s7 }
  0x27   : > { %p1848_p0 = por %p2089_p13, %p54_p6  ;;  %p45_p3 = scmp.eq.s32.totalorder %s44_s16, 0 }
  0x28   : > { %1404 = dma.hbm_to_vmem [thread:$0]  (!%p1824_p11), %s2086_s2, 512, %s208_s30, [#allocation7], %s1712_s9, %s1712_s9, %s1713_s10  }
  0x29   : > { %p1420_p11 = scmp.lt.s32.totalorder %s1709_s23, 2  ;;  %s224_s17 = sand.u32 1, %s1697_s20  }
  0x2a   : > { %s1283_s25 = sshll.u32 %s224_s17, 3  ;;  %s1284_s30 = sshll.u32 %s1705_s22, 7 }
  0x2b   : > { %s1857_s29 = scalar_select %p45_p3, %s1697_s20, %s47_s13  }
  0x2c   : > { %s2092_s0 = sld [smem:[#allocation20_spill]]  ;;  %s228_s10 = scalar_lea.vmem [#allocation3], %s1283_s25 }
  0x2d   : > { %2091 = sst [smem:[#allocation19_spill]] %s1857_s29  ;;  %s235_s11 = sshll.u32 %s228_s10, 4  ;;  %s236_s11 = int_to_ptr.vmem [resolvable:$true] %s235_s11 }
  0x2e   : > { %p1865_p5 = pnand %p1420_p11, %p1842_p12  ;;  %s242_s16 = sand.u32 1, %s1709_s23  }
  0x2f   : > { %s225_s2 = scalar_lea.sflag [#allocation4], %s224_s17  ;;  %s1548_s13 = scalar_lea.vmem %s236_s11, 128 }
  0x30   : > { %p1537_p7 = pneg %p1865_p5  ;;  %p1549_p2 = scmp.ne.s32.totalorder %s236_s11, %s1548_s13 }
  0x31   : > { %s1714_s25 = smov [#allocation3]  }
  0x32   : > { %s233_s9 = scalar_lea.hbm %s2092_s0, %s1284_s30  ;;  %p1551_p6 = pnand %p1549_p2, %p1537_p7 }
  0x33   : > { %s1553_s30 = sshll.u32 %s1714_s25, 4  ;;  %s1554_s30 = int_to_ptr.vmem [resolvable:$false] %s1553_s30 }
  0x34   : > { %p1552_p9 = pneg %p1551_p6  ;;  %s1555_s14 = scalar_lea.vmem %s1554_s30, 256 }
  0x35   : > { %p1556_p12 = scmp.lt.s32.totalorder %s236_s11, %s1554_s30  ;;  %p1557_p13 = scmp.lt.s32.totalorder %s1555_s14, %s1548_s13 }
  0x37   : > { %p1558_p11 = por %p1557_p13, %p1556_p12 }
  0x39   : > { %p1559_p3 = pnand %p1558_p11, %p1552_p9 }
  0x3b   : > { %1562 = shalt.err (!%p1559_p3)
}
  0x3c   : > { %1408 = dma.hbm_to_vmem [thread:$0]  (!%p1865_p5), %s233_s9, 128, %s236_s11, %s225_s2  }
  0x3d   : > { %s1285_s6 = sshll.u32 %s1705_s22, 4  ;;  %s245_s8 = scalar_lea.vmem [#allocation6], %s224_s17 }
  0x3e   : > { %s252_s10 = sshll.u32 %s245_s8, 4  ;;  %s250_s29 = scalar_lea.hbm %s2072_s1, %s1285_s6  ;;  %s253_s10 = int_to_ptr.vmem [resolvable:$true] %s252_s10 }
  0x3f   : > { %s243_s25 = scalar_lea.sflag [#allocation7], %s242_s16  ;;  %s1576_s20 = scalar_lea.vmem %s253_s10, 16 }
  0x40   : > { %p1577_p2 = scmp.ne.s32.totalorder %s253_s10, %s1576_s20  ;;  %s1715_s13 = smov [#allocation6]  }
  0x41   : > { %s1581_s30 = sshll.u32 %s1715_s13, 4  ;;  %s1582_s30 = int_to_ptr.vmem [resolvable:$false] %s1581_s30 }
  0x42   : > { %p1579_p6 = pnand %p1577_p2, %p1537_p7  ;;  %s1583_s14 = scalar_lea.vmem %s1582_s30, 32 }
  0x43   : > { %p1584_p12 = scmp.lt.s32.totalorder %s253_s10, %s1582_s30  ;;  %p1585_p13 = scmp.lt.s32.totalorder %s1583_s14, %s1576_s20 }
  0x44   : > { %p1580_p9 = pneg %p1579_p6 }
  0x45   : > { %p1586_p11 = por %p1585_p13, %p1584_p12 }
  0x47   : > { %p1587_p3 = pnand %p1586_p11, %p1580_p9 }
  0x49   : > { %1590 = shalt.err (!%p1587_p3)
}
  0x4a   : > { %1411 = dma.hbm_to_vmem [thread:$0]  (!%p1865_p5), %s250_s29, 16, %s253_s10, %s243_s25  }
  0x4b   : > { %261 = sbr.rel (%p1815_p8) target bundleno = 1316 (0x524), region = 36  ;;  %s1889_s0 = sand.u32 (!%p1815_p8), 1, %s1693_s19  }
  0x4c   : > { %s1287_s2 = sshll.u32 (!%p1815_p8), %s1889_s0, 3  ;;  %s264_s7 = scalar_lea.sflag (!%p1815_p8), [#allocation4], %s1889_s0 }
  0x4d   : > { %s267_s20 = scalar_lea.vmem (!%p1815_p8), [#allocation3], %s1287_s2 }
  0x50   : > { %1668 = dma.done.wait (%p1805_p4), %s264_s7, 128  }
  0x51   : > { %1670 = vsyncadd (%p1805_p4), %s264_s7, 4294967168  ;;  %s272_s28 = sand.u32 1, %s1796_s24   ;;  %s275_s29 = scalar_lea.vmem [#allocation6], %s1889_s0 }
  0x52   : > { %s273_s17 = scalar_lea.sflag [#allocation7], %s272_s28 }
  0x53   : > { %1672 = dma.done.wait (%p1805_p4), %s273_s17, 16  }
  0x54   : > { %1674 = vsyncadd (%p1805_p4), %s273_s17, 4294967280 }
  0x55   : > { %1676 = dma.done.wait (%p61_p1), [#allocation7], 512  }
  0x56   : > { %1678 = vsyncadd (%p61_p1), [#allocation7], 4294966784  ;;  %v1716_v0 = vmov 0.0   ;;  %vm1717_vm0 = vmmov 0   ;;  %v319_v1 = vld [vmem:[#allocation8 + $0x18] sm:$0xff]  ;;  %v318_v2 = vld [vmem:[#allocation8 + $0x10] sm:$0xff] }
  0x57   : > { %1338 = vmatprep.subr.mxu0 %v1716_v0  ;;  %1346 = vmatprep.mubr.msk.f32.mxu0 %vm1717_vm0, %v1716_v0  ;;  %v317_v3 = vld [vmem:[#allocation8 + $0x8] sm:$0xff]  ;;  %v316_v4 = vld [vmem:[#allocation8] sm:$0xff]  ;;  %vm328_vm1 = vcmask 261120   ;;  %s1718_s9 = smov 96   ;;  %s1719_s11 = smov 120   ;;  %vm412_vm2 = vcmask 64512  }
  0x58   : > { %1349 = vmatprep.subr.mxu1 %v1716_v0  ;;  %1351 = vmatprep.mubr.msk.f32.mxu1 %vm1717_vm0, %v1716_v0  ;;  %v315_v5 = vld [vmem:[%s267_s20] sm:$0xff]  ;;  %v1291_v6 = vld [vmem:[%s2074_s3] ss:$0 sm:$0xff]  ;;  %s1720_s12 = smov 88   ;;  %s1721_s16 = smov 80  }
  0x59   : > { %1339 = vmatpush3.msra.mxu0 %v319_v1  ;;  %s1722_s6 = smov 112   ;;  %s1723_s8 = smov 72   ;;  %v1293_v18 = vld [vmem:[%s275_s29] ss:$0 sm:$0xff] }
  0x5a   : > { %1340 = vmatprep.subr.mxu0 %v1716_v0  ;;  %s1724_s10 = smov 104   ;;  %s1725_s25 = smov 56  }
  0x5b   : > { %1341 = vmatpush3.msra.mxu0 %v318_v2  ;;  %s1726_s13 = smov 64   ;;  %s1727_s30 = smov 48  }
  0x5c   : > { %1342 = vmatprep.subr.mxu0 %v1716_v0  ;;  %s1728_s14 = smov 40   ;;  %s1290_s7 = sshll.u32 %s1889_s0, 5 }
  0x5d   : > { %1343 = vmatpush3.msra.mxu0 %v317_v3  ;;  %s1966_s20 = scalar_lea.vmem [#allocation10], %s1290_s7  ;;  %s1729_s28 = smov 8  }
  0x5e   : > { %1344 = vmatprep.subr.mxu0 %v1716_v0  ;;  %s1730_s17 = smov 16   ;;  %s1731_s29 = smov 24  }
  0x5f   : > { %1345 = vmatpush3.msra.mxu0 %v316_v4  ;;  %s1316_s24 = sshll.u32 %s1701_s21, 9  ;;  %s1133_s26 = sshll.u32 %s1966_s20, 4  ;;  %s1996_s26 = int_to_ptr.vmem [resolvable:$true] %s1133_s26 }
  0x60   : > { %1347 = vmatmul.mubr.msk.f32.vlgmr.msra.gmra.mxu0 %vm328_vm1, %v315_v5  ;;  %1359 = vmatprep.subr.mxu0 %v1716_v0 }
  0x61   : > { %1361 = vmatprep.mubr.msk.f32.mxu0 %vm1717_vm0, %v1716_v0 }
 0x120   : > { %v398_v7 = vpop.f32.mrf.mxu0 }
 0x121   : > { %v1925_v8 = vadd.f32 %v1291_v6, %v398_v7 }
 0x122   : > { %v1348_v9 = vpop.f32.mrf.mxu0 }
 0x123   : > { %410 = vrot.lane.b32.xlu0 %v1925_v8, %s1718_s9  ;;  %v402_v10 = vmul.f32 0.35355338, %v1925_v8 }
 0x125   : > { %577 = vrot.lane.b32.xlu1 %v402_v10, %s1719_s11 }
 0x127   : > { %579 = vrot.lane.b32.xlu0 %v1925_v8, %s1720_s12  ;;  %s1994_s12 = scalar_lea.hbm %s2076_s5, %s1316_s24 }
 0x129   : > { %752 = vrot.lane.b32.xlu1 %v1925_v8, %s1721_s16  ;;  %s1105_s16 = scalar_lea.sflag [#allocation11], %s1889_s0 }
 0x12b   : > { %750 = vrot.lane.b32.xlu0 %v402_v10, %s1722_s6  ;;  %s1591_s6 = scalar_lea.vmem %s1996_s26, 512 }
 0x12c   : > { %p1592_p1 = scmp.ne.s32.totalorder %s1996_s26, %s1591_s6 }
 0x12d   : > { %925 = vrot.lane.b32.xlu1 %v1925_v8, %s1723_s8  ;;  %s1732_s8 = smov [#allocation10]  }
 0x12e   : > { %p1593_p4 = pnand %p1592_p1, %p1848_p0 }
 0x12f   : > { %923 = vrot.lane.b32.xlu0 %v402_v10, %s1724_s10  ;;  %s1595_s10 = sshll.u32 %s1732_s8, 4  ;;  %s1596_s10 = int_to_ptr.vmem [resolvable:$false] %s1595_s10 }
 0x130   : > { %p1594_p8 = pneg %p1593_p4  ;;  %p1598_p5 = scmp.lt.s32.totalorder %s1996_s26, %s1596_s10 }
 0x195   : > { %v411_v11 = vpop.permute.xlu0 %410 }
 0x196   : > { %1350 = vmatpush3.xpose.msk.msra.mxu1 %vm412_vm2, %v411_v11 }
 0x197   : > { %v578_v12 = vpop.permute.xlu1 %577  ;;  %1354 = vmatprep.subr.mxu1 %v1716_v0 }
 0x199   : > { %v580_v13 = vpop.permute.xlu0 %579  ;;  %1352 = vmatmul.mubr.msk.f32.vlgmr.msra.gmra.mxu1 %vm412_vm2, %v402_v10 }
 0x19a   : > { %1360 = vmatpush3.xpose.msk.msra.mxu0 %vm412_vm2, %v580_v13  ;;  %1356 = vmatprep.mubr.msk.f32.mxu1 %vm1717_vm0, %v1716_v0 }
 0x19b   : > { %v753_v14 = vpop.permute.xlu1 %752  ;;  %1369 = vmatprep.subr.mxu0 %v1716_v0 }
 0x19d   : > { %1362 = vmatmul.mubr.msk.f32.vlgmr.msra.gmra.mxu0 %vm412_vm2, %v578_v12  ;;  %v751_v15 = vpop.permute.xlu0 %750 }
 0x19e   : > { %1370 = vmatpush3.xpose.msk.msra.mxu0 %vm412_vm2, %v753_v14  ;;  %1371 = vmatprep.mubr.msk.f32.mxu0 %vm1717_vm0, %v1716_v0 }
 0x19f   : > { %1379 = vmatprep.subr.mxu0 %v1716_v0  ;;  %v926_v16 = vpop.permute.xlu1 %925 }
 0x1a1   : > { %1372 = vmatmul.mubr.msk.f32.vlgmr.msra.gmra.mxu0 %vm412_vm2, %v751_v15  ;;  %v924_v17 = vpop.permute.xlu0 %923 }
 0x1a2   : > { %1380 = vmatpush3.xpose.msk.msra.mxu0 %vm412_vm2, %v926_v16  ;;  %1381 = vmatprep.mubr.msk.f32.mxu0 %vm1717_vm0, %v1716_v0 }
 0x1a5   : > { %1382 = vmatmul.mubr.msk.f32.vlgmr.msra.gmra.mxu0 %vm412_vm2, %v924_v17 }
 0x259   : > { %v484_v19 = vpop.f32.mrf.mxu1 }
 0x25a   : > { %v485_v20 = vadd.f32 %v1293_v18, %v484_v19 }
 0x25b   : > { %v1353_v21 = vpop.f32.mrf.mxu1 }
 0x25c   : > { %v488_v22 = vsel %vm412_vm2, %v485_v20, -inf }
 0x25d   : > { %489 = vmax.xlane.f32.xlu1 %v488_v22  ;;  %v651_v23 = vpop.f32.mrf.mxu0 }
 0x25e   : > { %v652_v24 = vadd.f32 %v1293_v18, %v651_v23 }
 0x25f   : > { %v1363_v25 = vpop.f32.mrf.mxu0 }
 0x260   : > { %v655_v26 = vsel %vm412_vm2, %v652_v24, -inf }
 0x261   : > { %656 = vmax.xlane.f32.xlu0 %v655_v26  ;;  %v824_v27 = vpop.f32.mrf.mxu0 }
 0x262   : > { %v825_v28 = vadd.f32 %v1293_v18, %v824_v27 }
 0x263   : > { %v1373_v29 = vpop.f32.mrf.mxu0 }
 0x264   : > { %v828_v30 = vsel %vm412_vm2, %v825_v28, -inf }
 0x265   : > { %829 = vmax.xlane.f32.xlu0 %v828_v30  ;;  %v997_v31 = vpop.f32.mrf.mxu0 }
 0x266   : > { %v998_v32 = vadd.f32 %v1293_v18, %v997_v31 }
 0x267   : > { %v1383_v33 = vpop.f32.mrf.mxu0 }
 0x268   : > { %v1001_v34 = vsel %vm412_vm2, %v998_v32, -inf }
 0x269   : > { %1002 = vmax.xlane.f32.xlu1 %v1001_v34 }
 0x27a   : > { %666 = vrot.lane.b32.xlu1 %v1925_v8, %s1725_s25  ;;  %s1597_s25 = scalar_lea.vmem %s1596_s10, 1024 }
 0x27b   : > { %p1599_p7 = scmp.lt.s32.totalorder %s1597_s25, %s1591_s6 }
 0x27d   : > { %p1600_p2 = por %p1599_p7, %p1598_p5 }
 0x27f   : > { %p1601_p6 = pnand %p1600_p2, %p1594_p8 }
 0x2e6   : > { %v490_v35 = vpop.xlane.xlu1 %489 }
 0x2e7   : > { %v491_v36 = vsub.f32 %v485_v20, %v490_v35 }
 0x2e9   : > { %v492_v37 = vmul.f32 1.442695, %v491_v36 }
 0x2ea   : > { %v657_v38 = vpop.xlane.xlu0 %656 }
 0x2eb   : > { %1491 = vpow2.f32 %v492_v37  ;;  %v658_v39 = vsub.f32 %v652_v24, %v657_v38 }
 0x2ed   : > { %v659_v40 = vmul.f32 1.442695, %v658_v39 }
 0x2ee   : > { %v830_v50 = vpop.xlane.xlu0 %829 }
 0x2ef   : > { %1493 = vpow2.f32 %v659_v40  ;;  %v831_v51 = vsub.f32 %v825_v28, %v830_v50 }
 0x2f1   : > { %v832_v52 = vmul.f32 1.442695, %v831_v51 }
 0x2f2   : > { %v1003_v41 = vpop.xlane.xlu1 %1002 }
 0x2f3   : > { %v1004_v42 = vsub.f32 %v998_v32, %v1003_v41 }
 0x2f5   : > { %v1005_v43 = vmul.f32 1.442695, %v1004_v42 }
 0x2f6   : > { %v667_v55 = vpop.permute.xlu1 %666 }
 0x2f7   : > { %1495 = vpow2.f32 %v1005_v43 }
 0x2f8   : > { %v1492_v44 = vpop.eup %1491  ;;  %1497 = vpow2.f32 %v832_v52 }
 0x2f9   : > { %v494_v45 = vsel %vm412_vm2, %v1492_v44, 0.0 }
 0x2fa   : > { %495 = vadd.xlane.f32.xlu0 %v494_v45 }
 0x2fc   : > { %v1494_v46 = vpop.eup %1493 }
 0x2fd   : > { %v661_v47 = vsel %vm412_vm2, %v1494_v46, 0.0 }
 0x2fe   : > { %662 = vadd.xlane.f32.xlu1 %v661_v47 }
 0x304   : > { %v1496_v48 = vpop.eup %1495 }
 0x305   : > { %v1007_v49 = vsel %vm412_vm2, %v1496_v48, 0.0  ;;  %v1498_v53 = vpop.eup %1497 }
 0x306   : > { %1008 = vadd.xlane.f32.xlu1 %v1007_v49  ;;  %v834_v54 = vsel %vm412_vm2, %v1498_v53, 0.0 }
 0x310   : > { %499 = vrot.lane.b32.xlu0 %v1925_v8, %s1726_s13 }
 0x317   : > { %839 = vrot.lane.b32.xlu1 %v1925_v8, %s1727_s30 }
 0x32f   : > { %835 = vadd.xlane.f32.xlu0 %v834_v54 }
 0x345   : > { %1012 = vrot.lane.b32.xlu0 %v1925_v8, %s1728_s14 }
 0x383   : > { %v496_v56 = vpop.xlane.xlu0 %495 }
 0x384   : > { %1499 = vrcp.f32 %v496_v56 }
 0x387   : > { %v500_v57 = vpop.permute.xlu0 %499  ;;  %v663_v58 = vpop.xlane.xlu1 %662 }
 0x388   : > { %1501 = vrcp.f32 %v663_v58  ;;  %1355 = vmatpush3.msra.mxu1 %v500_v57 }
 0x389   : > { %1364 = vmatprep.subr.mxu1 %v1716_v0 }
 0x38f   : > { %v1009_v59 = vpop.xlane.xlu1 %1008 }
 0x390   : > { %1503 = vrcp.f32 %v1009_v59 }
 0x391   : > { %v1500_v60 = vpop.eup %1499 }
 0x392   : > { %v498_v61 = vmul.f32 %v1500_v60, %v1492_v44 }
 0x393   : > { %v840_v1 = vpop.permute.xlu1 %839 }
 0x394   : > { %1357 = vmatmul.mubr.msk.f32.vlgmr.msra.gmra.mxu1 %vm412_vm2, %v498_v61  ;;  %575 = vst.msk [vmem:[%s1966_s20] sm:$0xff] %vm412_vm2, %v498_v61 }
 0x395   : > { %v1502_v62 = vpop.eup %1501  ;;  %1365 = vmatpush3.msra.mxu1 %v667_v55  ;;  %1366 = vmatprep.mubr.msk.f32.mxu1 %vm1717_vm0, %v1716_v0 }
 0x396   : > { %1374 = vmatprep.subr.mxu1 %v1716_v0  ;;  %v665_v63 = vmul.f32 %v1502_v62, %v1494_v46 }
 0x398   : > { %1367 = vmatmul.mubr.msk.f32.vlgmr.msra.gmra.mxu1 %vm412_vm2, %v665_v63  ;;  %1300 = vst.msk [vmem:[%s1966_s20 + $0x8] sm:$0xff] %vm412_vm2, %v665_v63 }
 0x399   : > { %1375 = vmatpush3.msra.mxu1 %v840_v1  ;;  %1376 = vmatprep.mubr.msk.f32.mxu1 %vm1717_vm0, %v1716_v0 }
 0x39a   : > { %1384 = vmatprep.subr.mxu1 %v1716_v0 }
 0x39d   : > { %v1504_v2 = vpop.eup %1503 }
 0x39e   : > { %v1011_v3 = vmul.f32 %v1504_v2, %v1496_v48 }
 0x3a0   : > { %1308 = vst.msk [vmem:[%s1966_s20 + $0x18] sm:$0xff] %vm412_vm2, %v1011_v3 }
 0x3b8   : > { %v836_v4 = vpop.xlane.xlu0 %835 }
 0x3b9   : > { %1505 = vrcp.f32 %v836_v4 }
 0x3bc   : > { %v1013_v7 = vpop.permute.xlu0 %1012 }
 0x3c6   : > { %v1506_v5 = vpop.eup %1505 }
 0x3c7   : > { %v838_v6 = vmul.f32 %v1506_v5, %v1498_v53 }
 0x3c9   : > { %1377 = vmatmul.mubr.msk.f32.vlgmr.msra.gmra.mxu1 %vm412_vm2, %v838_v6  ;;  %1304 = vst.msk [vmem:[%s1966_s20 + $0x10] sm:$0xff] %vm412_vm2, %v838_v6 }
 0x3ca   : > { %1385 = vmatpush3.msra.mxu1 %v1013_v7  ;;  %1386 = vmatprep.mubr.msk.f32.mxu1 %vm1717_vm0, %v1716_v0 }
 0x3cd   : > { %1387 = vmatmul.mubr.msk.f32.vlgmr.msra.gmra.mxu1 %vm412_vm2, %v1011_v3 }
 0x454   : > { %v571_v8 = vpop.f32.mrf.mxu1 }
 0x455   : > { %576 = vst.msk [vmem:[#allocation2] sm:$0xff] %vm412_vm2, %v571_v8 }
 0x456   : > { %v1358_v9 = vpop.f32.mrf.mxu1 }
 0x458   : > { %v738_v10 = vpop.f32.mrf.mxu1 }
 0x459   : > { %745 = vrot.lane.b32.xlu1 %v738_v10, %s1729_s28 }
 0x45a   : > { %v1368_v11 = vpop.f32.mrf.mxu1 }
 0x489   : > { %v911_v12 = vpop.f32.mrf.mxu1 }
 0x48a   : > { %918 = vrot.lane.b32.xlu0 %v911_v12, %s1730_s17 }
 0x48b   : > { %v1378_v13 = vpop.f32.mrf.mxu1 }
 0x48d   : > { %v1084_v0 = vpop.f32.mrf.mxu1 }
 0x48e   : > { %1091 = vrot.lane.b32.xlu1 %v1084_v0, %s1731_s29 }
 0x48f   : > { %v1388_v14 = vpop.f32.mrf.mxu1 }
 0x490   : > { %1604 = shalt.err (!%p1601_p6)
}
 0x491   : > { %s1605_s13 = scalar_lea.hbm %s1994_s12, 512  ;;  %s1609_s7 = scalar_lea.hbm %s2076_s5, 1024 }
 0x492   : > { %p1606_p9 = scmp.ne.s32.totalorder %s1994_s12, %s1605_s13  ;;  %p1610_p11 = scmp.lt.s32.totalorder %s1994_s12, %s2076_s5 }
 0x493   : > { %p1611_p3 = scmp.lt.s32.totalorder %s1609_s7, %s1605_s13 }
 0x494   : > { %p1607_p12 = pnand %p1606_p9, %p1848_p0 }
 0x495   : > { %p1612_p1 = por %p1611_p3, %p1610_p11 }
 0x496   : > { %p1608_p13 = pneg %p1607_p12 }
 0x498   : > { %p1613_p4 = pnand %p1612_p1, %p1608_p13 }
 0x49a   : > { %1616 = shalt.err (!%p1613_p4)
}
 0x49b   : > { %s1733_s29 = smov 128   ;;  %vm748_vm3 = vcmask 130112   ;;  %vm921_vm4 = vcmask 195712   ;;  %vm1094_vm5 = vcmask 261312   ;;  %s1311_s24 = sshll.u32 %s1701_s21, 7 }
 0x49c   : > { %1398 = dma.vmem_to_hbm [thread:$0]  (%p1848_p0), %s1996_s26, 512, %s1994_s12, %s1105_s16, %s1733_s29, %s1733_s29, %s1729_s28  }
 0x49d   : > { %s307_s9 = scalar_lea.vmem [#allocation9], %s1287_s2  ;;  %s2028_s28 = scalar_lea.hbm %s2075_s4, %s1311_s24 }
 0x49e   : > { %s1119_s11 = sshll.u32 %s307_s9, 4  ;;  %s1100_s26 = scalar_lea.sflag [#allocation5], %s1889_s0  ;;  %s1120_s11 = int_to_ptr.vmem [resolvable:$true] %s1119_s11 }
 0x49f   : > { %s1617_s12 = scalar_lea.vmem %s1120_s11, 128  ;;  %s1734_s16 = smov [#allocation9]  }
 0x4a0   : > { %p1618_p8 = scmp.ne.s32.totalorder %s1120_s11, %s1617_s12  ;;  %s1621_s21 = sshll.u32 %s1734_s16, 4  ;;  %s1622_s21 = int_to_ptr.vmem [resolvable:$false] %s1621_s21 }
 0x4a1   : > { %s1623_s2 = scalar_lea.vmem %s1622_s21, 256  ;;  %p1624_p2 = scmp.lt.s32.totalorder %s1120_s11, %s1622_s21 }
 0x4a2   : > { %p1619_p5 = pnand %p1618_p8, %p1848_p0  ;;  %p1625_p6 = scmp.lt.s32.totalorder %s1623_s2, %s1617_s12 }
 0x4a4   : > { %p1620_p7 = pneg %p1619_p5  ;;  %p1626_p9 = por %p1625_p6, %p1624_p2 }
 0x4a6   : > { %p1627_p12 = pnand %p1626_p9, %p1620_p7 }
 0x4cb   : > { %v746_v15 = vpop.permute.xlu1 %745 }
 0x4cc   : > { %749 = vst.msk [vmem:[#allocation2] sm:$0xff] %vm748_vm3, %v746_v15 }
 0x4fc   : > { %v919_v16 = vpop.permute.xlu0 %918 }
 0x4fd   : > { %922 = vst.msk [vmem:[#allocation2] sm:$0xff] %vm921_vm4, %v919_v16 }
 0x500   : > { %v1092_v17 = vpop.permute.xlu1 %1091 }
 0x501   : > { %1095 = vst.msk [vmem:[#allocation2] sm:$0xff] %vm1094_vm5, %v1092_v17 }
 0x508   : > { %v1096_v18 = vld [vmem:[#allocation2] sm:$0xff] }
 0x509   : > { %1507 = vtanh.f32 %v1096_v18 }
 0x516   : > { %v1508_v19 = vpop.eup %1507 }
 0x517   : > { %1098 = vst.msk [vmem:[%s307_s9] sm:$0xff] %vm328_vm1, %v1508_v19 }
 0x518   : > { %1630 = shalt.err (!%p1627_p12)
}
 0x519   : > { %s1631_s10 = scalar_lea.hbm %s2028_s28, 128  ;;  %s1635_s13 = scalar_lea.hbm %s2075_s4, 256 }
 0x51a   : > { %p1632_p13 = scmp.ne.s32.totalorder %s2028_s28, %s1631_s10  ;;  %p1636_p1 = scmp.lt.s32.totalorder %s2028_s28, %s2075_s4 }
 0x51b   : > { %p1637_p4 = scmp.lt.s32.totalorder %s1635_s13, %s1631_s10 }
 0x51c   : > { %p1633_p11 = pnand %p1632_p13, %p1848_p0 }
 0x51d   : > { %p1638_p8 = por %p1637_p4, %p1636_p1 }
 0x51e   : > { %p1634_p3 = pneg %p1633_p11 }
 0x520   : > { %p1639_p5 = pnand %p1638_p8, %p1634_p3 }
 0x522   : > { %1642 = shalt.err (!%p1639_p5)
}
 0x523   : > { %1397 = dma.vmem_to_hbm [thread:$0]  (%p1848_p0), %s1120_s11, 128, %s2028_s28, %s1100_s26  }
 0x524 PF: > { %s1148_s7 = sand.u32 1, %s1689_s18   ;;  %p2094_p7 = scmp.ne.s32.totalorder %s2083_s27, 0 }
 0x525   : > { %s1149_s20 = scalar_lea.sflag [#allocation5], %s1148_s7 }
 0x526   : > { %p1413_p2 = pnand %p1282_p10, %p2094_p7 }
 0x528   : > { %p1414_p6 = pneg %p1413_p2 }
 0x52a   : > { %1680 = dma.done.wait (%p1414_p6), %s1149_s20, 128  }
 0x52b   : > { %1682 = vsyncadd (%p1414_p6), %s1149_s20, 4294967168  ;;  %s1158_s17 = scalar_lea.sflag [#allocation11], %s1148_s7 }
 0x52c   : > { %1684 = dma.done.wait (%p1414_p6), %s1158_s17, 512  }
 0x52d   : > { %1686 = vsyncadd (%p1414_p6), %s1158_s17, 4294966784  ;;  %s28_s23 = sadd.s32 1, %s1709_s23   ;;  %s2095_s15 = sld [smem:[#allocation17_spill]] }
 0x52e   : > { %p25_p9 = scmp.ge.s32.totalorder %s28_s23, 4   ;;  %s2096_s20 = sld [smem:[#allocation19_spill]] }
 0x52f   : > { %s2097_s29 = sld [smem:[#allocation18_spill]]  ;;  %s2098_s18 = smov %s1693_s19 }
 0x530   : > { %s2100_s21 = smov %s1705_s22 }
 0x531   :  { %27 = sbr.rel (!%p25_p9) target bundleno = 13 (0xd), region = 118 }
 0x533   : > { %s2099_s19 = smov %s2095_s15 }
 0x535   : > { %s2101_s22 = smov %s2097_s29 }
 0x536   :  { %1163 = vsyncpa [#allocation4], 1 }
 0x537   :  { %1165 = vsyncpa [#allocation4 + $0x1], 1 }
 0x538   :  { %1166 = vsyncpa [#allocation7], 1 }
 0x539   :  { %1168 = vsyncpa [#allocation7 + $0x1], 1 }
 0x53a   :  { %1169 = vsyncpa [#allocation5], 1 }
 0x53b   :  { %1171 = vsyncpa [#allocation5 + $0x1], 1 }
 0x53c   :  { %1172 = vsyncpa [#allocation11], 1 }
 0x53d   :  { %1174 = vsyncpa [#allocation11 + $0x1], 1 }

</bundles_post_ra>
